<compile_context>
chip_gen: v7x
topology: tpu7x:2x2x1
jax: 0.10.0
libtpu: 0.0.40
codegen_flags: <defaults>
</compile_context>

<pallas_src>
import functools

import jax
import jax.numpy as jnp
from jax.experimental import pallas as pl
from jax.experimental.pallas import tpu as pltpu


# ---------------------------------------------------------------------------
# Kernel: per batch-tile top-k membership count (rank test, no softmax).
# ---------------------------------------------------------------------------
def _topk_count_kernel(probs_ref, label_ref, count_ref, *, k: int):
    x = probs_ref[...].astype(jnp.float32)          # (TB, C)
    tb, c = x.shape
    labels = label_ref[...]                          # (TB, 1) int32 (-1 = pad row)

    col = jax.lax.broadcasted_iota(jnp.int32, (tb, c), 1)
    neg_inf = jnp.float32(-jnp.inf)

    # Value of the true-label column per row.  Padded rows (label == -1) match
    # no column -> x_label = -inf -> rank = C >= k -> never counted.
    x_label = jnp.max(jnp.where(col == labels, x, neg_inf), axis=1, keepdims=True)

    # Number of entries that outrank the label (strictly greater value, or
    # equal value at a lower index — torch.topk's lowest-index tie-break).
    beats = jnp.logical_or(
        x > x_label,
        jnp.logical_and(x == x_label, col < labels),
    )
    rank = jnp.sum(beats.astype(jnp.int32), axis=1, keepdims=True)   # (TB, 1)
    correct = rank < k                                                # (TB, 1)

    cnt = jnp.sum(correct.astype(jnp.int32))                          # exact int32
    # Lane-dense, (8,128)-aligned partial-count block for this tile.
    count_ref[...] = jnp.broadcast_to(cnt, count_ref.shape)


# ---------------------------------------------------------------------------
# Wrapper: padding, batch tiling, partial-count reduction.
# ---------------------------------------------------------------------------
@functools.partial(jax.jit, static_argnames=("k",))
def topk_accuracy(y_probs, y_true_label, k: int = 1):
    """Returns (accuracy, num_correct) matching TopKAccuracy.forward."""
    B, C = y_probs.shape
    labels = y_true_label.reshape(-1, 1).astype(jnp.int32)

    # Batch tile: ~4 MiB of probs per block (x2 for double buffering is well
    # under v7x's 32 MiB scoped / 64 MiB physical VMEM), multiple of 8 sublanes.
    itemsize = jnp.dtype(y_probs.dtype).itemsize
    row_bytes = C * itemsize
    tb_cap = max(8, min(1024, ((4 * 1024 * 1024) // max(row_bytes, 1)) // 8 * 8))
    b_pad8 = ((B + 7) // 8) * 8
    tb = min(tb_cap, b_pad8)
    G = pl.cdiv(b_pad8, tb)
    Bp = G * tb

    if Bp > B:
        y_probs = jnp.pad(y_probs, ((0, Bp - B), (0, 0)))
        labels = jnp.pad(labels, ((0, Bp - B), (0, 0)), constant_values=-1)

    # TODO(synk): for vocab-scale C add an inner class-tile grid axis with a
    # small VMEM scratch for the two rank counters; C is kept whole here.
    counts = pl.pallas_call(
        functools.partial(_topk_count_kernel, k=k),
        out_shape=jax.ShapeDtypeStruct((G, 8, 128), jnp.int32),
        grid_spec=pltpu.PrefetchScalarGridSpec(
            num_scalar_prefetch=0,
            grid=(G,),
            in_specs=[
                pl.BlockSpec((tb, C), lambda i: (i, 0)),
                pl.BlockSpec((tb, 1), lambda i: (i, 0)),
            ],
            out_specs=pl.BlockSpec((1, 8, 128), lambda i: (i, 0, 0)),
        ),
        compiler_params=pltpu.CompilerParams(
            dimension_semantics=("parallel",),
            vmem_limit_bytes=32 * 1024 * 1024,
        ),
        cost_estimate=pl.CostEstimate(
            flops=3 * Bp * C,
            transcendentals=0,
            bytes_accessed=Bp * C * itemsize + Bp * 4 + G * 8 * 128 * 4,
        ),
    )(y_probs, labels)

    num_correct = jnp.sum(counts[:, 0, 0])                 # int32, exact
    accuracy = num_correct.astype(jnp.float32) / B
    return accuracy, num_correct


# ---------------------------------------------------------------------------
# Stateful metric wrapper mirroring the PyTorch module (device-side running
# sums — no per-step host sync; sync only happens in get_metric / user code).
# ---------------------------------------------------------------------------
class TopKAccuracy:
    def __init__(self, k: int = 1):
        self.k = k
        self.reset()

    def forward(self, y_probs, y_true_label):
        acc, num_correct = topk_accuracy(y_probs, y_true_label, k=self.k)
        self.correct = self.correct + num_correct
        self.total = self.total + y_probs.shape[0]
        return acc

    def get_metric(self):
        return self.correct.astype(jnp.float32) / self.total

    def reset(self):
        self.correct = jnp.int32(0)
        self.total = 0


if __name__ == "__main__":
    key = jax.random.PRNGKey(0)
    k1, k2 = jax.random.split(key)

    B, C, K = 8, 16, 3
    y_probs = jax.random.normal(k1, (B, C), dtype=jnp.float32)
    y_true = jax.random.randint(k2, (B,), 0, C, dtype=jnp.int32)

    metric = TopKAccuracy(k=K)
    acc = metric.forward(y_probs, y_true)
    acc = jax.block_until_ready(acc)

    # Reference with the original module's semantics (softmax -> topk indices).
    probs_ref = jax.nn.softmax(y_probs, axis=1)
    topk_idx = jax.lax.top_k(probs_ref, K)[1]
    ref_correct = int(jnp.sum(topk_idx == y_true[:, None]))
    assert abs(float(acc) - ref_correct / B) < 1e-6, (float(acc), ref_correct / B)
    assert abs(float(metric.get_metric()) - ref_correct / B) < 1e-6

    print("KERNEL_OK")
</pallas_src>

<mosaic_0001>
module attributes {stable_mosaic.version = 11 : i64} {
  func.func @_topk_count_kernel(%arg0: i32, %arg1: memref<8x16xf32, #tpu.memory_space<vmem>>, %arg2: memref<8x1xi32, #tpu.memory_space<vmem>>, %arg3: memref<1x8x128xi32, #tpu.memory_space<vmem>>) attributes {dimension_semantics = [#tpu.dimension_semantics<parallel>], iteration_bounds = array<i64: 1>, scalar_prefetch = 0 : i64, scratch_operands = 0 : i64, tpu.core_type = #tpu.core_type<tc>, window_params = [{transform_indices = @transform_0, window_bounds = array<i64: 8, 16>}, {transform_indices = @transform_1, window_bounds = array<i64: 8, 1>}, {transform_indices = @transform_2, window_bounds = array<i64: 1, 8, 128>}]} {
    %c0 = arith.constant 0 : index
    %c0_0 = arith.constant 0 : index
    %0 = vector.load %arg1[%c0, %c0_0] : memref<8x16xf32, #tpu.memory_space<vmem>>, vector<8x16xf32>
    %c0_1 = arith.constant 0 : index
    %c0_2 = arith.constant 0 : index
    %1 = vector.load %arg2[%c0_1, %c0_2] : memref<8x1xi32, #tpu.memory_space<vmem>>, vector<8x1xi32>
    %2 = tpu.iota {dimensions = array<i32: 1>} : vector<8x16xi32>
    %3 = vector.broadcast %1 : vector<8x1xi32> to vector<8x16xi32>
    %4 = arith.cmpi eq, %2, %3 : vector<8x16xi32>
    %cst = arith.constant 0xFF800000 : f32
    %5 = vector.broadcast %cst : f32 to vector<8x16xf32>
    %6 = arith.select %4, %0, %5 : vector<8x16xi1>, vector<8x16xf32>
    %cst_3 = arith.constant dense<0xFF800000> : vector<8xf32>
    %7 = vector.multi_reduction <maximumf>, %6, %cst_3 [1] : vector<8x16xf32> to vector<8xf32>
    %8 = vector.shape_cast %7 : vector<8xf32> to vector<8x1xf32>
    %9 = vector.broadcast %8 : vector<8x1xf32> to vector<8x16xf32>
    %10 = arith.cmpf ogt, %0, %9 : vector<8x16xf32>
    %11 = vector.broadcast %8 : vector<8x1xf32> to vector<8x16xf32>
    %12 = arith.cmpf oeq, %0, %11 : vector<8x16xf32>
    %13 = vector.broadcast %1 : vector<8x1xi32> to vector<8x16xi32>
    %14 = arith.cmpi slt, %2, %13 : vector<8x16xi32>
    %15 = arith.andi %12, %14 : vector<8x16xi1>
    %16 = arith.ori %10, %15 : vector<8x16xi1>
    %17 = arith.extui %16 : vector<8x16xi1> to vector<8x16xi32>
    %cst_4 = arith.constant dense<0> : vector<8xi32>
    %18 = vector.multi_reduction <add>, %17, %cst_4 [1] : vector<8x16xi32> to vector<8xi32>
    %19 = vector.shape_cast %18 : vector<8xi32> to vector<8x1xi32>
    %c3_i32 = arith.constant 3 : i32
    %20 = vector.broadcast %c3_i32 : i32 to vector<8x1xi32>
    %21 = arith.cmpi slt, %19, %20 : vector<8x1xi32>
    %22 = arith.extui %21 : vector<8x1xi1> to vector<8x1xi32>
    %23 = vector.shape_cast %22 : vector<8x1xi32> to vector<1x8x1xi32>
    %cst_5 = arith.constant dense<0> : vector<1xi32>
    %24 = vector.multi_reduction <add>, %23, %cst_5 [1, 2] : vector<1x8x1xi32> to vector<1xi32>
    %25 = vector.shape_cast %24 : vector<1xi32> to vector<1x1x1xi32>
    %26 = vector.extract %25[0, 0, 0] : i32 from vector<1x1x1xi32>
    %27 = vector.broadcast %26 : i32 to vector<1x8x128xi32>
    %c0_6 = arith.constant 0 : index
    %c0_7 = arith.constant 0 : index
    %c0_8 = arith.constant 0 : index
    %28 = vector.load %arg3[%c0_6, %c0_7, %c0_8] : memref<1x8x128xi32, #tpu.memory_space<vmem>>, vector<1x8x128xi32>
    tpu.vector_store %arg3[%c0_6, %c0_7, %c0_8], %27 {strides = array<i32>} : memref<1x8x128xi32, #tpu.memory_space<vmem>>, vector<1x8x128xi32>,
    return
  }
  func.func @transform_0(%arg0: i32) -> (i32, i32) {
    %c0_i32 = arith.constant 0 : i32
    %c0_i32_0 = arith.constant 0 : i32
    return %arg0, %c0_i32 : i32, i32
  }
  func.func @transform_1(%arg0: i32) -> (i32, i32) {
    %c0_i32 = arith.constant 0 : i32
    %c0_i32_0 = arith.constant 0 : i32
    return %arg0, %c0_i32 : i32, i32
  }
  func.func @transform_2(%arg0: i32) -> (i32, i32, i32) {
    %c0_i32 = arith.constant 0 : i32
    %c0_i32_0 = arith.constant 0 : i32
    %c0_i32_1 = arith.constant 0 : i32
    return %arg0, %c0_i32, %c0_i32_0 : i32, i32, i32
  }
}

</mosaic_0001>

<bundles_post_ra>
// kernel: topk_accuracy.1
= control target key start
LH: loop header
LB: loop body
LE: loop exit
PB: predicated region body
PF: predicated region fallthrough
CT: control target
= control target key end

     0   :  { %v62_v0 = vmov 0   ;;  %v13_v2 = vlaneseq  ;;  %vm20_vm0 = vcmask 130048   ;;  %s87_s1 = inlined_call_operand.vmem [shape: s32[8,1], index: 1, kind: input, shape index: {}]   ;;  %s88_s0 = inlined_call_operand.vmem [shape: f32[8,16], index: 0, kind: input, shape index: {}]   ;;  %s89_s2 = inlined_call_operand.vmem [shape: s32[1,8,128], index: 2, kind: output, shape index: {}]  }
   0x1   :  { %61 = vset.pattern.permute.xlu0 %v62_v0  ;;  %v12_v1 = vld [vmem:[%s87_s1] sm:$0xff] }
   0x2   :  { %16 = vperm.xlu0 %61, %v12_v1   ;;  %v14_v3 = vand.u32 127, %v13_v2  ;;  %v11_v4 = vld [vmem:[%s88_s0] sm:$0xff] }
  0x81   :  { %v17_v5 = vpop.permute.xlu0 %16 }
  0x82   :  { %vm18_vm1 = vcmp.eq.s32.totalorder %v14_v3, %v17_v5  ;;  %vm26_vm2 = vcmp.lt.s32.totalorder %v14_v3, %v17_v5 }
  0x83   :  { %v19_v6 = vsel %vm18_vm1, %v11_v4, -inf }
  0x84   :  { %v21_v7 = vsel %vm20_vm0, %v19_v6, -inf }
  0x85   :  { %22 = vmax.xlane.f32.xlu0 %v21_v7 }
 0x112   :  { %v23_v8 = vpop.xlane.xlu0 %22 }
 0x113   :  { %vm24_vm3 = vcmp.gt.f32.partialorder %v11_v4, %v23_v8  ;;  %vm25_vm4 = vcmp.eq.f32.partialorder %v11_v4, %v23_v8 }
 0x114   :  { %vm27_vm5 = vmand %vm25_vm4, %vm26_vm2 }
 0x115   :  { %vm28_vm6 = vmor %vm24_vm3, %vm27_vm5 }
 0x116   :  { %v29_v9 = vsel %vm28_vm6, 1, %v62_v0 }
 0x117   :  { %v30_v10 = vsel %vm20_vm0, %v29_v9, 0 }
 0x118   :  { %v32_v11 = vshrl.u32 %v30_v10, 16  ;;  %v31_v13 = vand.u32 65535, %v30_v10 }
 0x11a   :  { %v34_v12 = vcvt.s32.f32 %v32_v11  ;;  %v33_v14 = vcvt.s32.f32 %v31_v13 }
 0x11c   :  { %37 = vadd.xlane.f32.xlu1 %v34_v12 }
 0x120   :  { %35 = vadd.xlane.f32.xlu1 %v33_v14 }
 0x1a9   :  { %v38_v15 = vpop.xlane.xlu1 %37 }
 0x1aa   :  { %v40_v16 = vcvt.f32.s32 %v38_v15 }
 0x1ac   :  { %v41_v18 = vshll.u32 %v40_v16, 16 }
 0x1ad   :  { %v36_v17 = vpop.xlane.xlu1 %35 }
 0x1ae   :  { %v39_v19 = vcvt.f32.s32 %v36_v17 }
 0x1b0   :  { %v42_v20 = vadd.s32 %v41_v18, %v39_v19 }
 0x1b2   :  { %vm43_vm7 = vcmp.lt.s32.totalorder %v42_v20, 3 }
 0x1b3   :  { %v44_v21 = vsel %vm43_vm7, 1, %v62_v0 }
 0x1b4   :  { %v45_v22 = vrot.slane %v44_v21, 4 }
 0x1b6   :  { %v46_v23 = vadd.s32 %v45_v22, %v44_v21 }
 0x1b8   :  { %v47_v24 = vrot.slane %v46_v23, 2 }
 0x1ba   :  { %v48_v25 = vadd.s32 %v47_v24, %v46_v23 }
 0x1bc   :  { %v49_v26 = vrot.slane %v48_v25, 1 }
 0x1be   :  { %v50_v27 = vadd.s32 %v49_v26, %v48_v25 }
 0x1c0   :  { %58 = vpush %v50_v27 }
 0x1f1   :  { %s59_s0 = spop %58 }
 0x1f2   :  { %v52_v28 = vstv %s59_s0 }
 0x1f3   :  { %53 = vst [vmem:[%s89_s2] sm:$0xff] %v52_v28 }

</bundles_post_ra>
